<compile_context>
chip_gen: v7x
topology: tpu7x:2x2x1
jax: 0.10.0
libtpu: 0.0.40
codegen_flags: <defaults>
</compile_context>

<pallas_src>
import functools

import numpy as np
import jax
import jax.numpy as jnp
from jax import lax
from jax.experimental import pallas as pl
from jax.experimental.pallas import tpu as pltpu


def _focal_loss_kernel(x_ref, tgt_ref, out_ref, *, src_channels, c_lo,
                       alpha_vals, gamma, l_total, tile_rows):
    """One (batch element, L-tile) grid step.

    x_ref:   (1, c_span, tile_rows, 128) logits (used source channels only)
    tgt_ref: (1, tile_rows, 128) int32 class indices
    out_ref: (1, 1, 8, 128) lane-dense, sublane-reduced partial loss sums
    """
    li = pl.program_id(1)
    uniq = sorted(set(src_channels))                      # unique source channels
    counts = {s: float(src_channels.count(s)) for s in uniq}
    use_alpha = alpha_vals is not None

    tgt = tgt_ref[0]                                      # (tile_rows, 128) int32
    # Static channel selection: replicates PyTorch `input[:, ix_weights]`
    # where ix_weights is a 0/1 LongTensor index (channels 0/1 repeated).
    rows = {s: x_ref[0, s - c_lo].astype(jnp.float32) for s in uniq}

    # Stable log-softmax over the (duplicated) class columns, fully unrolled
    # as elementwise VPU/EUP ops — no cross-lane reductions.
    row_max = rows[uniq[0]]
    for s in uniq[1:]:
        row_max = jnp.maximum(row_max, rows[s])
    exps = {s: jnp.exp(rows[s] - row_max) for s in uniq}
    sum_exp = None
    for s in uniq:
        term = exps[s] if counts[s] == 1.0 else counts[s] * exps[s]
        sum_exp = term if sum_exp is None else sum_exp + term
    lse = jnp.log(sum_exp) + row_max

    # One-hot gather at the target class.  Per-class hits are merged per
    # unique source channel so duplicated channels cost one FMA each, not one
    # per class; alpha still needs the per-class weights.
    hit_ch = {s: None for s in uniq}
    at = jnp.zeros((tile_rows, 128), jnp.float32) if use_alpha else None
    for j, s in enumerate(src_channels):
        h = (tgt == j).astype(jnp.float32)
        hit_ch[s] = h if hit_ch[s] is None else hit_ch[s] + h
        if use_alpha:
            at = at + alpha_vals[j] * h
    # NOTE: targets outside [0, num_classes) silently contribute logit 0 /
    # alpha 0 here, whereas torch.gather would raise (documented divergence).

    logit_t = jnp.zeros((tile_rows, 128), jnp.float32)
    e_t = jnp.zeros((tile_rows, 128), jnp.float32)
    for s in uniq:
        logit_t = logit_t + hit_ch[s] * rows[s]
        e_t = e_t + hit_ch[s] * exps[s]

    logpt = logit_t - lse
    # pt == exp(logpt) == softmax prob; reuse the exponentials instead of a
    # second EUP exp per element (v7x is EUP/VALU-bound for this kernel).
    pt = e_t / sum_exp
    if use_alpha:
        logpt = logpt * at

    # (1 - pt) ** gamma  (repeated multiply for non-negative integer gamma)
    g = float(gamma)
    if g == int(g) and g >= 0:
        focal = jnp.ones_like(pt)
        for _ in range(int(g)):
            focal = focal * (1.0 - pt)
    else:
        focal = jnp.power(1.0 - pt, g)

    loss = -(focal * logpt)                               # (tile_rows, 128)

    n_groups = tile_rows // 8

    def _reduce(v):   # sublane-group adds on the VPU; output stays lane-dense
        return v.reshape(n_groups, 8, 128).sum(axis=0)[None, None]

    last = pl.num_programs(1) - 1

    # Padding / out-of-bounds rows can only live in the last L-block, so the
    # iota mask math is gated there; jnp.where keeps NaN/Inf garbage from the
    # partial-block tail from leaking (x * 0 would propagate NaN).
    @pl.when(li == last)
    def _():
        r = lax.broadcasted_iota(jnp.int32, (tile_rows, 128), 0)
        c = lax.broadcasted_iota(jnp.int32, (tile_rows, 128), 1)
        flat = li * (tile_rows * 128) + r * 128 + c
        out_ref[...] = _reduce(jnp.where(flat < l_total, loss, 0.0))

    @pl.when(li < last)
    def _():
        out_ref[...] = _reduce(loss)


def _vmem_plan():
    """Per-generation (tile VMEM budget, explicit vmem_limit_bytes)."""
    try:
        kind = jax.devices()[0].device_kind.lower()
    except Exception:
        kind = ""
    if "v2" in kind or "v3" in kind:
        return 10 << 20, 14 << 20
    if "v5 lite" in kind or "v5e" in kind or "v5lite" in kind:
        return 12 << 20, 16 << 20      # v5e: 16 MiB default scoped VMEM
    if "v7" in kind:
        return 20 << 20, 26 << 20      # v7x: only 64 MiB physical — keep headroom
    return 24 << 20, 30 << 20          # v6e & other 128 MiB-VMEM parts


def focal_loss(x, target, code_weights, *, gamma=0.0, alpha=None,
               size_average=True, max_tile_rows=1024, x_buffer_count=None):
    """Pallas implementation of FocalLoss.forward.  x: (N, C, H, W) NCHW.

    x_buffer_count: optional input-pipeline depth for the logits stream
    (e.g. 3 on v5e if profiling shows exposed DMA at grid-step boundaries).
    """
    code_weights = np.asarray(code_weights)
    # ix_weights = (code_weights > 0) used as a 0/1 *integer* index along the
    # channel axis, matching PyTorch's LongTensor-indexing semantics
    # (selects channels 0/1 repeatedly rather than masking channels).
    src_channels = tuple(int(v) for v in (code_weights > 0).astype(np.int64))
    c_out = len(src_channels)
    uniq = sorted(set(src_channels))
    c_lo, c_hi = uniq[0], uniq[-1]
    c_span = c_hi - c_lo + 1           # contiguous span of used source channels

    assert x.ndim > 2, "kernel expects conv-style (N, C, spatial...) input"
    # TODO(synk): 2-D (M, C) inputs (the PyTorch `dim() <= 2` path) are not handled.
    n, c_in = int(x.shape[0]), int(x.shape[1])
    l = int(np.prod(x.shape[2:]))

    # alpha handling, mirroring FocalLoss.__init__ / forward (baked-in constants)
    if alpha is None:
        alpha_vals = None
    else:
        if isinstance(alpha, (float, np.floating)):
            alpha_list = [float(alpha), 1.0 - float(alpha)]
        else:
            alpha_list = [float(v) for v in np.asarray(alpha).reshape(-1)]
        # classes beyond len(alpha) would make torch's alpha.gather raise;
        # here they get weight 0 so shapes stay static (documented divergence).
        alpha_vals = tuple((alpha_list + [0.0] * c_out)[:c_out])

    # Lane-dense layout: NCHW -> (N, C, L) -> (N, C, rows, 128).  L is padded
    # only up to the next multiple of 8*128 (single small pad), never up to a
    # multiple of the tile; a partial last tile is masked inside the kernel.
    x3 = x.reshape(n, c_in, l)
    tgt2 = target.reshape(n, l).astype(jnp.int32)

    rows_total = -(-l // 128)
    rows_pad = max(8, -(-rows_total // 8) * 8)
    l_pad = rows_pad * 128
    if l_pad != l:
        x3 = jnp.pad(x3, ((0, 0), (0, 0), (0, l_pad - l)))
        tgt2 = jnp.pad(tgt2, ((0, 0), (0, l_pad - l)))
    x4 = x3.reshape(n, c_in, rows_pad, 128)
    tgt3 = tgt2.reshape(n, rows_pad, 128)

    # Tile sizing: the biggest tile the per-generation VMEM budget allows
    # (double-buffered x + target blocks plus ~14 live f32 temporaries / row).
    block_budget, vmem_limit = _vmem_plan()
    bytes_per_row = ((c_span + 1) * 2 + 14) * 128 * 4
    cap = max(8, (block_budget // bytes_per_row) // 8 * 8)
    tile_rows = int(min(max(8, (max_tile_rows // 8) * 8), cap, rows_pad))
    n_l_blocks = -(-rows_pad // tile_rows)

    kernel = functools.partial(
        _focal_loss_kernel, src_channels=src_channels, c_lo=c_lo,
        alpha_vals=alpha_vals, gamma=float(gamma), l_total=l,
        tile_rows=tile_rows)

    c_blk = c_lo // c_span             # channel-block index selecting [c_lo, c_hi]
    x_spec_kwargs = {}
    if x_buffer_count is not None:     # optional deeper input pipeline (v5e sweep)
        x_spec_kwargs["pipeline_mode"] = pl.Buffered(int(x_buffer_count))
    x_spec = pl.BlockSpec((1, c_span, tile_rows, 128),
                          lambda b, i: (b, c_blk, i, 0), **x_spec_kwargs)

    partials = pl.pallas_call(
        kernel,
        out_shape=jax.ShapeDtypeStruct((n, n_l_blocks, 8, 128), jnp.float32),
        grid=(n, n_l_blocks),
        in_specs=[
            x_spec,
            pl.BlockSpec((1, tile_rows, 128), lambda b, i: (b, i, 0)),
        ],
        out_specs=pl.BlockSpec((1, 1, 8, 128), lambda b, i: (b, i, 0, 0)),
        compiler_params=pltpu.CompilerParams(
            dimension_semantics=("parallel", "parallel"),
            vmem_limit_bytes=vmem_limit),
    )(x4, tgt3)

    total = jnp.sum(partials)          # tiny final reduce in XLA (n*n_l_blocks*8*128)
    m = n * l
    return total / jnp.float32(m) if size_average else total


def focal_loss_ref(x, target, code_weights, gamma, alpha, size_average):
    """Pure-JAX reference mirroring the PyTorch forward."""
    ix = (np.asarray(code_weights) > 0).astype(np.int32)
    x = jnp.take(x, jnp.asarray(ix), axis=1)
    n, c = x.shape[0], x.shape[1]
    x = jnp.transpose(x.reshape(n, c, -1), (0, 2, 1)).reshape(-1, c)
    t = target.reshape(-1).astype(jnp.int32)
    logp = jax.nn.log_softmax(x, axis=1)
    logpt = jnp.take_along_axis(logp, t[:, None], axis=1)[:, 0]
    pt = jnp.exp(logpt)
    if alpha is not None:
        a = jnp.asarray(alpha, dtype=jnp.float32)
        logpt = logpt * a[t]
    loss = -((1.0 - pt) ** float(gamma)) * logpt
    return loss.mean() if size_average else loss.sum()


if __name__ == "__main__":
    key = jax.random.PRNGKey(0)
    k1, k2, k3, k4 = jax.random.split(key, 4)

    # Case 1: typical use of the module (NCHW input, alpha list, gamma=2, mean)
    N, C, H, W = 2, 4, 16, 16
    code_weights = np.array([0.5, 0.0, 1.0, 2.0], dtype=np.float32)
    gamma = 2.0
    alpha = [0.1, 0.2, 0.3, 0.4]
    x = jax.random.normal(k1, (N, C, H, W), dtype=jnp.float32)
    num_classes = len(code_weights)   # class count after ix_weights indexing
    target = jax.random.randint(k2, (N, H, W), 0, num_classes, dtype=jnp.int32)

    out = focal_loss(x, target, code_weights, gamma=gamma, alpha=alpha,
                     size_average=True)
    out = jax.block_until_ready(out)
    ref = focal_loss_ref(x, target, code_weights, gamma, alpha, True)
    assert np.allclose(np.asarray(out), np.asarray(ref),
                       rtol=1e-5, atol=1e-5), (out, ref)

    # Case 2: no alpha, gamma=0, sum reduction, ragged spatial size (L % 128 != 0)
    N2, C2, H2, W2 = 1, 2, 5, 7
    cw2 = np.array([1.0, 0.0], dtype=np.float32)
    x2 = jax.random.normal(k3, (N2, C2, H2, W2), dtype=jnp.float32)
    t2 = jax.random.randint(k4, (N2, H2, W2), 0, len(cw2), dtype=jnp.int32)
    out2 = focal_loss(x2, t2, cw2, gamma=0.0, alpha=None, size_average=False)
    out2 = jax.block_until_ready(out2)
    ref2 = focal_loss_ref(x2, t2, cw2, 0.0, None, False)
    assert np.allclose(np.asarray(out2), np.asarray(ref2),
                       rtol=1e-5, atol=1e-5), (out2, ref2)

    print("KERNEL_OK")
</pallas_src>

<mosaic_0001>
module attributes {stable_mosaic.version = 11 : i64} {
  func.func @_focal_loss_kernel(%arg0: i32, %arg1: i32, %arg2: memref<1x2x8x128xf32, #tpu.memory_space<vmem>>, %arg3: memref<1x8x128xi32, #tpu.memory_space<vmem>>, %arg4: memref<1x1x8x128xf32, #tpu.memory_space<vmem>>) attributes {dimension_semantics = [#tpu.dimension_semantics<parallel>, #tpu.dimension_semantics<parallel>], iteration_bounds = array<i64: 2, 1>, scalar_prefetch = 0 : i64, scratch_operands = 0 : i64, tpu.core_type = #tpu.core_type<tc>, window_params = [{transform_indices = @transform_0, window_bounds = array<i64: 1, 2, 8, 128>}, {transform_indices = @transform_1, window_bounds = array<i64: 1, 8, 128>}, {transform_indices = @transform_2, window_bounds = array<i64: 1, 1, 8, 128>}]} {
    %c0 = arith.constant 0 : index
    %c0_0 = arith.constant 0 : index
    %c0_1 = arith.constant 0 : index
    %0 = vector.load %arg3[%c0, %c0_0, %c0_1] : memref<1x8x128xi32, #tpu.memory_space<vmem>>, vector<1x8x128xi32>
    %1 = vector.shape_cast %0 : vector<1x8x128xi32> to vector<8x128xi32>
    %c0_2 = arith.constant 0 : index
    %c0_3 = arith.constant 0 : index
    %c0_4 = arith.constant 0 : index
    %c0_5 = arith.constant 0 : index
    %2 = vector.load %arg2[%c0_2, %c0_3, %c0_4, %c0_5] : memref<1x2x8x128xf32, #tpu.memory_space<vmem>>, vector<1x1x8x128xf32>
    %3 = vector.shape_cast %2 : vector<1x1x8x128xf32> to vector<8x128xf32>
    %c0_6 = arith.constant 0 : index
    %c1 = arith.constant 1 : index
    %c0_7 = arith.constant 0 : index
    %c0_8 = arith.constant 0 : index
    %4 = vector.load %arg2[%c0_6, %c1, %c0_7, %c0_8] : memref<1x2x8x128xf32, #tpu.memory_space<vmem>>, vector<1x1x8x128xf32>
    %5 = vector.shape_cast %4 : vector<1x1x8x128xf32> to vector<8x128xf32>
    %6 = arith.maximumf %3, %5 : vector<8x128xf32>
    %7 = arith.subf %3, %6 : vector<8x128xf32>
    %8 = math.exp %7 : vector<8x128xf32>
    %9 = arith.subf %5, %6 : vector<8x128xf32>
    %10 = math.exp %9 : vector<8x128xf32>
    %cst = arith.constant 3.000000e+00 : f32
    %11 = vector.broadcast %cst : f32 to vector<8x128xf32>
    %12 = arith.mulf %11, %10 : vector<8x128xf32>
    %13 = arith.addf %8, %12 : vector<8x128xf32>
    %14 = math.log %13 : vector<8x128xf32>
    %15 = arith.addf %14, %6 : vector<8x128xf32>
    %cst_9 = arith.constant 0.000000e+00 : f32
    %16 = vector.broadcast %cst_9 : f32 to vector<8x128xf32>
    %c0_i32 = arith.constant 0 : i32
    %17 = vector.broadcast %c0_i32 : i32 to vector<8x128xi32>
    %18 = arith.cmpi eq, %1, %17 : vector<8x128xi32>
    %19 = arith.extui %18 : vector<8x128xi1> to vector<8x128xi32>
    %20 = arith.sitofp %19 : vector<8x128xi32> to vector<8x128xf32>
    %cst_10 = arith.constant 1.000000e-01 : f32
    %21 = vector.broadcast %cst_10 : f32 to vector<8x128xf32>
    %22 = arith.mulf %21, %20 : vector<8x128xf32>
    %23 = arith.addf %16, %22 : vector<8x128xf32>
    %c1_i32 = arith.constant 1 : i32
    %24 = vector.broadcast %c1_i32 : i32 to vector<8x128xi32>
    %25 = arith.cmpi eq, %1, %24 : vector<8x128xi32>
    %26 = arith.extui %25 : vector<8x128xi1> to vector<8x128xi32>
    %27 = arith.sitofp %26 : vector<8x128xi32> to vector<8x128xf32>
    %cst_11 = arith.constant 2.000000e-01 : f32
    %28 = vector.broadcast %cst_11 : f32 to vector<8x128xf32>
    %29 = arith.mulf %28, %27 : vector<8x128xf32>
    %30 = arith.addf %23, %29 : vector<8x128xf32>
    %c2_i32 = arith.constant 2 : i32
    %31 = vector.broadcast %c2_i32 : i32 to vector<8x128xi32>
    %32 = arith.cmpi eq, %1, %31 : vector<8x128xi32>
    %33 = arith.extui %32 : vector<8x128xi1> to vector<8x128xi32>
    %34 = arith.sitofp %33 : vector<8x128xi32> to vector<8x128xf32>
    %35 = arith.addf %20, %34 : vector<8x128xf32>
    %cst_12 = arith.constant 3.000000e-01 : f32
    %36 = vector.broadcast %cst_12 : f32 to vector<8x128xf32>
    %37 = arith.mulf %36, %34 : vector<8x128xf32>
    %38 = arith.addf %30, %37 : vector<8x128xf32>
    %c3_i32 = arith.constant 3 : i32
    %39 = vector.broadcast %c3_i32 : i32 to vector<8x128xi32>
    %40 = arith.cmpi eq, %1, %39 : vector<8x128xi32>
    %41 = arith.extui %40 : vector<8x128xi1> to vector<8x128xi32>
    %42 = arith.sitofp %41 : vector<8x128xi32> to vector<8x128xf32>
    %43 = arith.addf %35, %42 : vector<8x128xf32>
    %cst_13 = arith.constant 4.000000e-01 : f32
    %44 = vector.broadcast %cst_13 : f32 to vector<8x128xf32>
    %45 = arith.mulf %44, %42 : vector<8x128xf32>
    %46 = arith.addf %38, %45 : vector<8x128xf32>
    %cst_14 = arith.constant 0.000000e+00 : f32
    %47 = vector.broadcast %cst_14 : f32 to vector<8x128xf32>
    %cst_15 = arith.constant 0.000000e+00 : f32
    %48 = vector.broadcast %cst_15 : f32 to vector<8x128xf32>
    %49 = arith.mulf %27, %3 : vector<8x128xf32>
    %50 = arith.addf %47, %49 : vector<8x128xf32>
    %51 = arith.mulf %27, %8 : vector<8x128xf32>
    %52 = arith.addf %48, %51 : vector<8x128xf32>
    %53 = arith.mulf %43, %5 : vector<8x128xf32>
    %54 = arith.addf %50, %53 : vector<8x128xf32>
    %55 = arith.mulf %43, %10 : vector<8x128xf32>
    %56 = arith.addf %52, %55 : vector<8x128xf32>
    %57 = arith.subf %54, %15 : vector<8x128xf32>
    %58 = arith.divf %56, %13 : vector<8x128xf32>
    %59 = arith.mulf %57, %46 : vector<8x128xf32>
    %cst_16 = arith.constant 1.000000e+00 : f32
    %60 = vector.broadcast %cst_16 : f32 to vector<8x128xf32>
    %cst_17 = arith.constant 1.000000e+00 : f32
    %61 = vector.broadcast %cst_17 : f32 to vector<8x128xf32>
    %62 = arith.subf %61, %58 : vector<8x128xf32>
    %63 = arith.mulf %60, %62 : vector<8x128xf32>
    %cst_18 = arith.constant 1.000000e+00 : f32
    %64 = vector.broadcast %cst_18 : f32 to vector<8x128xf32>
    %65 = arith.subf %64, %58 : vector<8x128xf32>
    %66 = arith.mulf %63, %65 : vector<8x128xf32>
    %67 = arith.mulf %66, %59 : vector<8x128xf32>
    %cst_19 = arith.constant 0.000000e+00 : f32
    %68 = vector.broadcast %cst_19 : f32 to vector<8x128xf32>
    %69 = arith.subf %68, %67 : vector<8x128xf32>
    %c0_i32_20 = arith.constant 0 : i32
    %70 = arith.cmpi eq, %arg1, %c0_i32_20 : i32
    %71 = arith.extui %70 : i1 to i32
    %c0_i32_21 = arith.constant 0 : i32
    %72 = arith.cmpi ne, %71, %c0_i32_21 : i32
    scf.if %72 {
      %76 = tpu.iota {dimensions = array<i32: 0>} : vector<8x128xi32>
      %77 = tpu.iota {dimensions = array<i32: 1>} : vector<8x128xi32>
      %c1024_i32 = arith.constant 1024 : i32
      %78 = arith.muli %arg1, %c1024_i32 : i32
      %c128_i32 = arith.constant 128 : i32
      %79 = vector.broadcast %c128_i32 : i32 to vector<8x128xi32>
      %80 = arith.muli %76, %79 : vector<8x128xi32>
      %81 = vector.broadcast %78 : i32 to vector<8x128xi32>
      %82 = arith.addi %81, %80 : vector<8x128xi32>
      %83 = arith.addi %82, %77 : vector<8x128xi32>
      %c256_i32 = arith.constant 256 : i32
      %84 = vector.broadcast %c256_i32 : i32 to vector<8x128xi32>
      %85 = arith.cmpi slt, %83, %84 : vector<8x128xi32>
      %cst_24 = arith.constant 0.000000e+00 : f32
      %86 = vector.broadcast %cst_24 : f32 to vector<8x128xf32>
      %87 = arith.select %85, %69, %86 : vector<8x128xi1>, vector<8x128xf32>
      %88 = vector.shape_cast %87 : vector<8x128xf32> to vector<1x8x128xf32>
      %cst_25 = arith.constant dense<0.000000e+00> : vector<8x128xf32>
      %89 = vector.multi_reduction <add>, %88, %cst_25 [0] : vector<1x8x128xf32> to vector<8x128xf32>
      %90 = vector.shape_cast %89 : vector<8x128xf32> to vector<1x1x8x128xf32>
      %c0_26 = arith.constant 0 : index
      %c0_27 = arith.constant 0 : index
      %c0_28 = arith.constant 0 : index
      %c0_29 = arith.constant 0 : index
      %91 = vector.load %arg4[%c0_26, %c0_27, %c0_28, %c0_29] : memref<1x1x8x128xf32, #tpu.memory_space<vmem>>, vector<1x1x8x128xf32>
      tpu.vector_store %arg4[%c0_26, %c0_27, %c0_28, %c0_29], %90 {strides = array<i32>} : memref<1x1x8x128xf32, #tpu.memory_space<vmem>>, vector<1x1x8x128xf32>,
    } else {
    }
    %c0_i32_22 = arith.constant 0 : i32
    %73 = arith.cmpi slt, %arg1, %c0_i32_22 : i32
    %74 = arith.extui %73 : i1 to i32
    %c0_i32_23 = arith.constant 0 : i32
    %75 = arith.cmpi ne, %74, %c0_i32_23 : i32
    scf.if %75 {
      %76 = vector.shape_cast %69 : vector<8x128xf32> to vector<1x8x128xf32>
      %cst_24 = arith.constant dense<0.000000e+00> : vector<8x128xf32>
      %77 = vector.multi_reduction <add>, %76, %cst_24 [0] : vector<1x8x128xf32> to vector<8x128xf32>
      %78 = vector.shape_cast %77 : vector<8x128xf32> to vector<1x1x8x128xf32>
      %c0_25 = arith.constant 0 : index
      %c0_26 = arith.constant 0 : index
      %c0_27 = arith.constant 0 : index
      %c0_28 = arith.constant 0 : index
      %79 = vector.load %arg4[%c0_25, %c0_26, %c0_27, %c0_28] : memref<1x1x8x128xf32, #tpu.memory_space<vmem>>, vector<1x1x8x128xf32>
      tpu.vector_store %arg4[%c0_25, %c0_26, %c0_27, %c0_28], %78 {strides = array<i32>} : memref<1x1x8x128xf32, #tpu.memory_space<vmem>>, vector<1x1x8x128xf32>,
    } else {
    }
    return
  }
  func.func @transform_0(%arg0: i32, %arg1: i32) -> (i32, i32, i32, i32) {
    %c0_i32 = arith.constant 0 : i32
    %c0_i32_0 = arith.constant 0 : i32
    %c0_i32_1 = arith.constant 0 : i32
    return %arg0, %c0_i32, %arg1, %c0_i32_0 : i32, i32, i32, i32
  }
  func.func @transform_1(%arg0: i32, %arg1: i32) -> (i32, i32, i32) {
    %c0_i32 = arith.constant 0 : i32
    %c0_i32_0 = arith.constant 0 : i32
    return %arg0, %arg1, %c0_i32 : i32, i32, i32
  }
  func.func @transform_2(%arg0: i32, %arg1: i32) -> (i32, i32, i32, i32) {
    %c0_i32 = arith.constant 0 : i32
    %c0_i32_0 = arith.constant 0 : i32
    %c0_i32_1 = arith.constant 0 : i32
    return %arg0, %arg1, %c0_i32, %c0_i32_0 : i32, i32, i32, i32
  }
}

</mosaic_0001>

<bundles_post_ra>
// kernel: tpu_custom_call.1
= control target key start
LH: loop header
LB: loop body
LE: loop exit
PB: predicated region body
PF: predicated region fallthrough
CT: control target
= control target key end

     0   :  { %7 = vsyncpa [#allocation3], 0  ;;  %s905_s0 = inlined_call_operand.hbm [shape: f32[2,4,8,128], index: 0, kind: input, shape index: {}]   ;;  %s906_s1 = inlined_call_operand.hbm [shape: s32[2,8,128], index: 1, kind: input, shape index: {}]   ;;  %s907_s2 = inlined_call_operand.hbm [shape: f32[2,1,8,128], index: 2, kind: output, shape index: {}]  }
   0x1   :  { %9 = vsyncpa [#allocation3 + $0x1], 0 }
   0x2   :  { %10 = vsyncpa [#allocation6], 0 }
   0x3   :  { %12 = vsyncpa [#allocation6 + $0x1], 0 }
   0x4   :  { %13 = vsyncpa [#allocation4], 0 }
   0x5   :  { %15 = vsyncpa [#allocation4 + $0x1], 0  ;;  %s686_s9 = smov 0   ;;  %s688_s10 = smov 0  }
   0x6   :  { %s690_s11 = smov 0   ;;  %s692_s12 = smov 0  }
   0x7   :  { %s694_s13 = smov 0   ;;  %s696_s14 = smov 0  }
   0x8 LB: > { %s416_s15 = sadd.s32 4294967295, %s663_s14   ;;  %s417_s16 = sadd.s32 4294967294, %s663_s14   ;;  %s663_s14 = sphi %s696_s14, %s21_s14   ;;  %s659_s13 = sphi %s694_s13, %s926_s13   ;;  %s655_s12 = sphi %s692_s12, %s925_s12   ;;  %s651_s11 = sphi %s690_s11, %s924_s11   ;;  %s647_s10 = sphi %s688_s10, %s923_s10   ;;  %s643_s9 = sphi %s686_s9, %s922_s9  }
   0x9   : > { %s33_s17 = sadd.s32 1, %s659_s13  ;;  %s42_s18 = sadd.s32 1, %s651_s11 }
   0xa   : > { %p35_p0 = scmp.ge.s32.totalorder %s33_s17, 2  ;;  %p49_p1 = scmp.ne.s32.totalorder %s651_s11, %s647_s10 }
   0xb   : > { %p50_p2 = scmp.eq.s32.totalorder %s663_s14, 0  ;;  %p55_p3 = scmp.ne.s32.totalorder %s647_s10, %s643_s9 }
   0xc   : > { %s928_s17 = smov (%p35_p0, %s33_s17), 0  ;;  %p56_p5 = scmp.eq.s32.totalorder %s416_s15, 0 }
   0xd   : > { %p727_p4 = por %p50_p2, %p49_p1  ;;  %s37_s20 = ssub.s32 %s659_s13, %s928_s17 }
   0xe   : > { %p109_p6 = scmp.eq.s32.totalorder %s416_s15, 1  ;;  %p40_p7 = scmp.eq.s32.totalorder %s37_s20, 0 }
   0xf   : > { %p733_p8 = por %p56_p5, %p55_p3  ;;  %p115_p10 = scmp.eq.s32.totalorder %s417_s16, 1 }
  0x10   : > { %p737_p9 = por %p109_p6, %p49_p1  ;;  %p456_p13 = scmp.lt.s32.totalorder %s663_s14, 2 }
  0x11   : > { %s911_s21 = scalar_select %p733_p8, 1, 0 }
  0x12   : > { %s912_s22 = scalar_select %p737_p9, 1, 0 }
  0x13   : > { %s742_s23 = scalar_select %p40_p7, %s651_s11, %s42_s18  }
  0x14   : > { %p744_p11 = por %p115_p10, %p55_p3  ;;  %s751_s25 = sand.u32 1, %s651_s11  }
  0x15   : > { %s420_s26 = sshll.u32 %s751_s25, 4  ;;  %s438_s27 = sshll.u32 %s659_s13, 9 }
  0x16   : > { %s913_s24 = scalar_select %p744_p11, 1, 0 }
  0x17   : > { %s758_s30 = scalar_lea.hbm %s905_s0, %s438_s27  ;;  %s139_s3 = scalar_lea.vmem [#allocation2], %s420_s26 }
  0x18   : > { %s147_s4 = sshll.u32 %s139_s3, 4  ;;  %p764_p0 = pnand %p456_p13, %p727_p4  ;;  %s760_s4 = int_to_ptr.vmem [resolvable:$true] %s147_s4 }
  0x19   : > { %s136_s6 = scalar_lea.sflag [#allocation3], %s751_s25  ;;  %s517_s7 = scalar_lea.hbm %s758_s30, 256 }
  0x1a   : > { %p518_p2 = scmp.ne.s32.totalorder %s758_s30, %s517_s7  ;;  %p519_p3 = pneg %p764_p0 }
  0x1b   : > { %s522_s16 = scalar_lea.hbm %s905_s0, 1024  ;;  %p523_p4 = scmp.lt.u32.totalorder %s758_s30, %s905_s0 }
  0x1c   : > { %p520_p5 = pnand %p519_p3, %p518_p2  ;;  %p524_p7 = scmp.lt.u32.totalorder %s522_s16, %s517_s7 }
  0x1d   : > { %p526_p13 = scmp.lt.u32.totalorder %s517_s7, %s758_s30 }
  0x1e   : > { %p521_p6 = pneg %p520_p5  ;;  %p525_p10 = por %p524_p7, %p523_p4 }
  0x20   : > { %p527_p12 = por %p526_p13, %p525_p10 }
  0x22   : > { %p528_p1 = pnand %p527_p12, %p521_p6 }
  0x24   : > { %531 = shalt.err (!%p528_p1)
}
  0x25   : > { %s532_s20 = scalar_lea.vmem %s760_s4, 256  ;;  %s665_s26 = smov [#allocation2]  }
  0x26   : > { %p533_p2 = scmp.ne.s32.totalorder %s760_s4, %s532_s20  ;;  %s537_s27 = sshll.u32 %s665_s26, 4  ;;  %s538_s27 = int_to_ptr.vmem [resolvable:$false] %s537_s27 }
  0x27   : > { %s539_s28 = scalar_lea.vmem %s538_s27, 512  ;;  %p540_p9 = scmp.lt.s32.totalorder %s760_s4, %s538_s27 }
  0x28   : > { %p535_p5 = pnand %p533_p2, %p519_p3  ;;  %p541_p4 = scmp.lt.s32.totalorder %s539_s28, %s532_s20 }
  0x2a   : > { %p536_p11 = pneg %p535_p5  ;;  %p542_p7 = por %p541_p4, %p540_p9 }
  0x2c   : > { %p543_p10 = pnand %p542_p7, %p536_p11 }
  0x2e   : > { %546 = shalt.err (!%p543_p10)
}
  0x2f   : > { %s666_s29 = smov 128   ;;  %s667_s3 = smov 8  }
  0x30   : > { %448 = dma.hbm_to_vmem [thread:$0]  (!%p764_p0), %s758_s30, 256, %s760_s4, %s136_s6, %s666_s29, %s666_s29, %s667_s3  }
  0x31   : > { %p174_p12 = scmp.lt.s32.totalorder %s663_s14, 3  ;;  %s423_s7 = sshll.u32 %s751_s25, 3 }
  0x32   : > { %s424_s8 = sshll.u32 %s659_s13, 7  ;;  %p915_p9 = scmp.ge.s32.totalorder %s663_s14, 1 }
  0x33   : > { %s809_s19 = scalar_lea.hbm %s906_s1, %s424_s8  ;;  %s161_s20 = scalar_lea.vmem [#allocation5], %s423_s7 }
  0x34   : > { %p802_p11 = pnand %p915_p9, %p174_p12  ;;  %s169_s26 = sshll.u32 %s161_s20, 4  ;;  %s170_s26 = int_to_ptr.vmem [resolvable:$true] %s169_s26 }
  0x35   : > { %s158_s30 = scalar_lea.sflag [#allocation6], %s751_s25  ;;  %s547_s4 = scalar_lea.hbm %s809_s19, 128 }
  0x36   : > { %s916_s15 = scalar_select %p802_p11, 1, 0 }
  0x37   : > { %p548_p1 = scmp.ne.s32.totalorder %s809_s19, %s547_s4  ;;  %s552_s28 = scalar_lea.hbm %s906_s1, 256 }
  0x38   : > { %p553_p2 = scmp.lt.u32.totalorder %s809_s19, %s906_s1  ;;  %p554_p5 = scmp.lt.u32.totalorder %s552_s28, %s547_s4 }
  0x39   : > { %p550_p6 = pnand %p548_p1, %p519_p3  ;;  %p556_p7 = scmp.lt.u32.totalorder %s547_s4, %s809_s19 }
  0x3a   : > { %p555_p4 = por %p554_p5, %p553_p2 }
  0x3b   : > { %p551_p13 = pneg %p550_p6 }
  0x3c   : > { %p557_p10 = por %p556_p7, %p555_p4 }
  0x3e   : > { %p558_p12 = pnand %p557_p10, %p551_p13 }
  0x40   : > { %561 = shalt.err (!%p558_p12)
}
  0x41   : > { %s562_s25 = scalar_lea.vmem %s170_s26, 128  ;;  %s668_s7 = smov [#allocation5]  }
  0x42   : > { %p563_p9 = scmp.ne.s32.totalorder %s170_s26, %s562_s25  ;;  %s567_s8 = sshll.u32 %s668_s7, 4  ;;  %s568_s8 = int_to_ptr.vmem [resolvable:$false] %s567_s8 }
  0x43   : > { %s569_s16 = scalar_lea.vmem %s568_s8, 256  ;;  %p570_p8 = scmp.lt.s32.totalorder %s170_s26, %s568_s8 }
  0x44   : > { %p565_p1 = pnand %p563_p9, %p519_p3  ;;  %p571_p11 = scmp.lt.s32.totalorder %s569_s16, %s562_s25 }
  0x46   : > { %p566_p6 = pneg %p565_p1  ;;  %p572_p2 = por %p571_p11, %p570_p8 }
  0x48   : > { %p573_p5 = pnand %p572_p2, %p566_p6 }
  0x4a   : > { %576 = shalt.err (!%p573_p5)
}
  0x4b   : > { %451 = dma.hbm_to_vmem [thread:$0]  (!%p764_p0), %s809_s19, 128, %s170_s26, %s158_s30  }
  0x4c   : > { %p917_p13 = scmp.ne.s32.totalorder %s916_s15, 0 }
  0x4d   : > { %s834_s18 = sand.u32 (!%p917_p13), 1, %s647_s10   ;;  %p918_p3 = scmp.ne.s32.totalorder (!%p917_p13), %s911_s21, 0 }
  0x4e   : > { %178 = sbr.rel (%p917_p13) target bundleno = 150 (0x96), region = 28  ;;  %s426_s20 = sshll.u32 (!%p917_p13), %s834_s18, 4 }
  0x4f   : > { %s181_s4 = scalar_lea.sflag (!%p917_p13), [#allocation3], %s834_s18  ;;  %s184_s6 = scalar_lea.vmem (!%p917_p13), [#allocation2], %s426_s20 }
  0x55   : > { %630 = dma.done.wait (%p918_p3), %s181_s4, 256  }
  0x56   : > { %632 = vsyncadd (%p918_p3), %s181_s4, 4294967040  ;;  %s427_s5 = sshll.u32 %s834_s18, 3  ;;  %s190_s15 = scalar_lea.sflag [#allocation6], %s834_s18 }
  0x57   : > { %s193_s19 = scalar_lea.vmem [#allocation5], %s427_s5 }
  0x58   : > { %634 = dma.done.wait (%p918_p3), %s190_s15, 128  }
  0x59   : > { %636 = vsyncadd (%p918_p3), %s190_s15, 4294967168  ;;  %v220_v0 = vld [vmem:[%s184_s6] sm:$0xff]  ;;  %v429_v1 = vld [vmem:[%s184_s6 + $0x8] sm:$0xff]  ;;  %v669_v8 = vmov 0.0   ;;  %v277_v23 = vlaneseq  ;;  %s218_s21 = scalar_lea.vmem [#allocation7], %s427_s5  ;;  %s435_s30 = sshll.u32 %s655_s12, 7 }
  0x5a   : > { %v223_v2 = vmax.f32 %v220_v0, %v429_v1  ;;  %v219_v7 = vld [vmem:[%s193_s19] sm:$0xff]  ;;  %s311_s26 = sshll.u32 %s218_s21, 4  ;;  %s858_s29 = scalar_lea.hbm %s907_s2, %s435_s30  ;;  %s853_s26 = int_to_ptr.vmem [resolvable:$true] %s311_s26 }
  0x5b   : > { %vm235_vm0 = vcmp.eq.s32.totalorder %v219_v7, 0  ;;  %vm245_vm1 = vcmp.eq.s32.totalorder %v219_v7, 2  ;;  %vm251_vm2 = vcmp.eq.s32.totalorder %v219_v7, 3  ;;  %vm240_vm3 = vcmp.eq.s32.totalorder %v219_v7, 1  ;;  %s297_s3 = scalar_lea.sflag [#allocation4], %s834_s18  ;;  %s577_s25 = scalar_lea.vmem %s853_s26, 128 }
  0x5c   : > { %v224_v3 = vsub.f32 %v220_v0, %v223_v2  ;;  %v227_v4 = vsub.f32 %v429_v1, %v223_v2  ;;  %v430_v9 = vsel %vm235_vm0, 1.0, %v669_v8  ;;  %v432_v10 = vsel %vm245_vm1, 1.0, %v669_v8  ;;  %p578_p8 = scmp.ne.s32.totalorder %s853_s26, %s577_s25  ;;  %p919_p0 = scmp.ne.s32.totalorder %s912_s22, 0 }
  0x5d   : > { %v248_v14 = vadd.f32 %v432_v10, %v430_v9  ;;  %v433_v15 = vsel %vm251_vm2, 1.0, %v669_v8  ;;  %v431_v17 = vsel %vm240_vm3, 1.0, %v669_v8  ;;  %v238_v19 = vmul.f32 0.1, %v430_v9  ;;  %s670_s12 = smov [#allocation7]  }
  0x5e   : > { %v225_v5 = vmul.f32 1.442695, %v224_v3  ;;  %v228_v6 = vmul.f32 1.442695, %v227_v4  ;;  %v243_v20 = vmul.f32 0.2, %v431_v17  ;;  %v257_v26 = vmul.f32 %v431_v17, %v220_v0  ;;  %p579_p11 = pnand %p578_p8, %p919_p0 }
  0x5f   : > { %v254_v18 = vadd.f32 %v433_v15, %v248_v14  ;;  %v249_v25 = vmul.f32 0.3, %v432_v10  ;;  %v278_v29 = vshrl.u32 %v277_v23, 7  ;;  %v255_v31 = vmul.f32 0.4, %v433_v15  ;;  %s581_s7 = sshll.u32 %s670_s12, 4  ;;  %s582_s7 = int_to_ptr.vmem [resolvable:$false] %s581_s7 }
  0x60   : > { %509 = vpow2.f32 %v225_v5  ;;  %v244_v24 = vadd.f32 %v243_v20, %v238_v19  ;;  %v280_v37 = vand.u32 127, %v277_v23  ;;  %p580_p4 = pneg %p579_p11  ;;  %s583_s8 = scalar_lea.vmem %s582_s7, 256 }
  0x61   : > { %511 = vpow2.f32 %v228_v6  ;;  %v261_v27 = vmul.f32 %v429_v1, %v254_v18  ;;  %v282_v38 = vmul.u32 128, %v278_v29  ;;  %p584_p7 = scmp.lt.s32.totalorder %s853_s26, %s582_s7  ;;  %p585_p10 = scmp.lt.s32.totalorder %s583_s8, %s577_s25 }
  0x62   : > { %v250_v30 = vadd.f32 %v249_v25, %v244_v24 }
  0x63   : > { %v262_v35 = vadd.f32 %v261_v27, %v257_v26  ;;  %v285_v44 = vadd.s32 %v282_v38, %v280_v37  ;;  %p586_p12 = por %p585_p10, %p584_p7 }
  0x64   : > { %v256_v40 = vadd.f32 %v255_v31, %v250_v30 }
  0x65   : > { %vm286_vm4 = vcmp.lt.s32.totalorder %v285_v44, 256  ;;  %p587_p9 = pnand %p586_p12, %p580_p4 }
  0x6a   : > { %v510_v11 = vpop.eup %509 }
  0x6b   : > { %v512_v12 = vpop.eup %511  ;;  %v259_v21 = vmul.f32 %v510_v11, %v431_v17 }
  0x6c   : > { %v230_v13 = vmul.f32 3.0, %v512_v12  ;;  %v263_v22 = vmul.f32 %v512_v12, %v254_v18 }
  0x6e   : > { %v231_v16 = vadd.f32 %v510_v11, %v230_v13  ;;  %v264_v28 = vadd.f32 %v263_v22, %v259_v21 }
  0x70   : > { %513 = vlog2.f32 %v231_v16 }
  0x71   : > { %515 = vrcp.f32 %v231_v16 }
  0x7a   : > { %v514_v32 = vpop.eup %513 }
  0x7b   : > { %v516_v33 = vpop.eup %515  ;;  %v233_v34 = vmul.f32 0.6931472, %v514_v32 }
  0x7c   : > { %v267_v36 = vmul.f32 %v516_v33, %v264_v28 }
  0x7d   : > { %v234_v39 = vadd.f32 %v233_v34, %v223_v2 }
  0x7e   : > { %v269_v41 = vsub.f32 1.0, %v267_v36 }
  0x7f   : > { %v265_v42 = vsub.f32 %v262_v35, %v234_v39 }
  0x80   : > { %v270_v43 = vmul.f32 %v269_v41, %v269_v41 }
  0x81   : > { %v268_v45 = vmul.f32 %v265_v42, %v256_v40 }
  0x83   : > { %v271_v46 = vmul.f32 %v270_v43, %v268_v45 }
  0x85   : > { %v272_v47 = vsub.f32 0.0, %v271_v46 }
  0x87   : > { %v287_v48 = vsel %vm286_vm4, %v272_v47, 0.0 }
  0x88   : > { %289 = vst [vmem:[%s218_s21] sm:$0xff] %v287_v48 }
  0x89   : > { %590 = shalt.err (!%p587_p9)
}
  0x8a   : > { %s591_s16 = scalar_lea.hbm %s858_s29, 128  ;;  %s595_s4 = scalar_lea.hbm %s907_s2, 256 }
  0x8b   : > { %p592_p1 = scmp.ne.s32.totalorder %s858_s29, %s591_s16  ;;  %p596_p5 = scmp.lt.u32.totalorder %s858_s29, %s907_s2 }
  0x8c   : > { %p597_p13 = scmp.lt.u32.totalorder %s595_s4, %s591_s16  ;;  %p599_p8 = scmp.lt.u32.totalorder %s591_s16, %s858_s29 }
  0x8d   : > { %p593_p6 = pnand %p592_p1, %p919_p0 }
  0x8e   : > { %p598_p3 = por %p597_p13, %p596_p5 }
  0x8f   : > { %p594_p2 = pneg %p593_p6 }
  0x90   : > { %p600_p11 = por %p599_p8, %p598_p3 }
  0x92   : > { %p601_p4 = pnand %p600_p11, %p594_p2 }
  0x94   : > { %604 = shalt.err (!%p601_p4)
}
  0x95   : > { %443 = dma.vmem_to_hbm [thread:$0]  (%p919_p0), %s853_s26, 128, %s858_s29, %s297_s3  }
  0x96 PF: > { %s323_s15 = sand.u32 1, %s643_s9   ;;  %p920_p7 = scmp.ne.s32.totalorder %s913_s24, 0 }
  0x97   : > { %p921_p10 = scmp.ge.s32.totalorder %s663_s14, 2  ;;  %s324_s19 = scalar_lea.sflag [#allocation4], %s323_s15 }
  0x99   : > { %p453_p12 = pnand %p921_p10, %p920_p7 }
  0x9b   : > { %638 = dma.done.wait (!%p453_p12), %s324_s19, 128  }
  0x9c   : > { %640 = vsyncadd (!%p453_p12), %s324_s19, 4294967168  ;;  %s21_s14 = sadd.s32 1, %s663_s14   ;;  %s922_s9 = smov %s647_s10 }
  0x9d   : > { %p18_p9 = scmp.ge.s32.totalorder %s21_s14, 4   ;;  %s923_s10 = smov %s651_s11 }
  0x9e   : > { %s924_s11 = smov %s742_s23  ;;  %s925_s12 = smov %s659_s13 }
  0x9f   : > { %s926_s13 = smov %s928_s17  ;;  %20 = sbr.rel (!%p18_p9) target bundleno = 8 (0x8), region = 95 }
  0xa6   :  { %329 = vsyncpa [#allocation3], 1 }
  0xa7   :  { %331 = vsyncpa [#allocation3 + $0x1], 1 }
  0xa8   :  { %332 = vsyncpa [#allocation6], 1 }
  0xa9   :  { %334 = vsyncpa [#allocation6 + $0x1], 1 }
  0xaa   :  { %335 = vsyncpa [#allocation4], 1 }
  0xab   :  { %337 = vsyncpa [#allocation4 + $0x1], 1 }

</bundles_post_ra>
